<compile_context>
chip_gen: v7x
topology: tpu7x:2x2x1
jax: 0.10.0
libtpu: 0.0.40
codegen_flags: <defaults>
</compile_context>

<pallas_src>
import jax
import jax.numpy as jnp
from jax.experimental import pallas as pl
from jax.experimental.pallas import tpu as pltpu


def _round_up(n, m):
    return ((n + m - 1) // m) * m


# Real layer dims: (30->16), (16->24), (24->20), (20->24), (24->1).
# Padded to 8-sublane multiples; each layer's padded input == previous padded output.
_IN_PAD = (32, 16, 24, 24, 24)
_OUT_PAD = (16, 24, 24, 24, 8)


def _mlp_kernel(x_ref, w_ref, b_ref, o_ref):
    """x_ref: (32, bt) bf16, feature rows 30:32 zero.
       w_ref: (5, 32, 32) bf16, layer k weight at [k, :out, :in] (zero-padded).
       b_ref: (5, 32, 1) f32 (zero-padded).
       o_ref: (1, bt) f32."""
    h = x_ref[...]                                   # (32, bt) bf16
    for k in range(5):                               # static Python unroll (5 layers)
        out_p, in_p = _OUT_PAD[k], _IN_PAD[k]
        w = w_ref[k, :out_p, :in_p]                  # tiny resident weight slice
        if w.dtype != h.dtype:
            w = w.astype(h.dtype)                    # ~1 vreg cast; activations never repacked
        acc = jnp.dot(w, h, preferred_element_type=jnp.float32)   # MXU, f32 acc (out_p, bt)
        acc = acc + b_ref[k, :out_p]                 # f32 bias (out_p, 1) broadcast over lanes
        # dropout(p=0.5) after layer 2 is an identity in eval/inference mode.
        h = jnp.maximum(acc, 0.0) if k < 4 else acc  # stays f32 between layers
    o_ref[...] = h[0:1, :]                           # only row 0 is the real 1-wide output


def pack_params(params, compute_dtype=jnp.bfloat16):
    """Pack w1..w5 / b1..b5 into one zero-padded (5,32,32) weight tensor (stored
    (out_features, in_features) so each layer is h <- W @ h) and one (5,32,1) f32 bias."""
    wpack = jnp.zeros((5, 32, 32), compute_dtype)
    bpack = jnp.zeros((5, 32, 1), jnp.float32)
    for k in range(5):
        w = params[f"w{k + 1}"]                      # (in, out)
        b = params[f"b{k + 1}"]                      # (1, out)
        fan_in, fan_out = w.shape
        wpack = wpack.at[k, :fan_out, :fan_in].set(w.T.astype(compute_dtype))
        bpack = bpack.at[k, :fan_out, 0].set(b.reshape(-1).astype(jnp.float32))
    return wpack, bpack


def anomaly_detector_forward(x, params, *, batch_tile=32768,
                             compute_dtype=jnp.bfloat16):
    """AnomalyDetector forward pass. x: (B, 30) f32. Returns (B, 1) f32."""
    B, F = x.shape
    assert F == 30

    # Lane-axis batch tile: multiple of 128, capped to the padded batch size.
    B128 = _round_up(B, 128)
    bt = _round_up(max(1, min(batch_tile, B128)), 128)
    # v7x has 2 TCs/chip: keep >=2 "parallel" grid steps whenever the batch spans
    # more than one 128-lane strip (harmless on single-TC v5e/v6e).
    if bt >= B128 and B128 >= 256:
        bt = _round_up(B128 // 2, 128)
    Bp = _round_up(B, bt)
    num_tiles = Bp // bt

    wpack, bpack = pack_params(params, compute_dtype)

    # Batch on lanes: cast to bf16 FIRST so the transpose/pad pass writes 2-byte elems,
    # then zero-pad to 32 feature rows and Bp batch columns.
    itemsize = jnp.dtype(compute_dtype).itemsize
    xT = jnp.zeros((32, Bp), compute_dtype).at[:30, :B].set(x.astype(compute_dtype).T)

    # VMEM/step: double-buffered x tile (32*bt*2B) + sublane-padded (8,bt) f32 output
    # + ~12 KiB of resident weights.  ~6 MiB at bt=32768 -> under every scoped default;
    # raise the limit only if a caller asks for a bigger tile.
    vmem_est = 2 * (32 * bt * itemsize + 8 * bt * 4) + (1 << 20)
    vmem_limit = min(vmem_est + (4 << 20), 64 << 20) if vmem_est > (16 << 20) else None

    flops = 2 * sum(o * i for o, i in zip(_OUT_PAD, _IN_PAD)) * Bp
    cost = pl.CostEstimate(
        flops=flops,
        transcendentals=0,
        bytes_accessed=(32 * Bp * itemsize                    # x^T
                        + Bp * 4                              # output row
                        + 5 * 32 * 32 * itemsize              # packed weights
                        + 5 * 32 * 4))                        # packed biases

    out = pl.pallas_call(
        _mlp_kernel,
        out_shape=jax.ShapeDtypeStruct((1, Bp), jnp.float32),
        grid_spec=pl.GridSpec(
            grid=(num_tiles,),
            in_specs=[
                pl.BlockSpec((32, bt), lambda i: (0, i)),        # x^T tile (lane-dense)
                pl.BlockSpec((5, 32, 32), lambda i: (0, 0, 0)),  # packed weights (resident)
                pl.BlockSpec((5, 32, 1), lambda i: (0, 0, 0)),   # packed biases (resident)
            ],
            out_specs=pl.BlockSpec((1, bt), lambda i: (0, i)),   # lane-dense output
        ),
        compiler_params=pltpu.CompilerParams(
            dimension_semantics=("parallel",),
            vmem_limit_bytes=vmem_limit),
        cost_estimate=cost,
    )(xT, wpack, bpack)

    return out[0, :B].reshape(B, 1)


def init_params(key):
    """Deterministic PyTorch-Linear-style init: U(-1/sqrt(fan_in), +1/sqrt(fan_in))."""
    dims = [(30, 16), (16, 24), (24, 20), (20, 24), (24, 1)]
    params = {}
    for i, (fan_in, fan_out) in enumerate(dims, start=1):
        key, kw, kb = jax.random.split(key, 3)
        bound = 1.0 / jnp.sqrt(jnp.float32(fan_in))
        params[f"w{i}"] = jax.random.uniform(
            kw, (fan_in, fan_out), jnp.float32, -bound, bound)
        params[f"b{i}"] = jax.random.uniform(
            kb, (1, fan_out), jnp.float32, -bound, bound)
    return params


def reference_forward(x, params, x_dtype=jnp.float32, w_dtype=jnp.float32):
    """Pure-JAX reference. x_dtype/w_dtype=bf16 mirrors the kernel's casts (bf16 x and
    weights, f32 accumulation/bias/ReLU, f32 activations between layers)."""
    h = x.astype(x_dtype).astype(jnp.float32)
    for i in range(1, 6):
        w = params[f"w{i}"].astype(w_dtype).astype(jnp.float32)
        z = jnp.dot(h, w, preferred_element_type=jnp.float32)
        z = z + params[f"b{i}"].astype(jnp.float32)
        h = jnp.maximum(z, 0.0) if i < 5 else z
    return h


if __name__ == "__main__":
    key = jax.random.PRNGKey(0)
    key, kx = jax.random.split(key)

    B = 300  # not a multiple of 128 -> exercises padding + the >=2-step parallel grid
    x = jax.random.normal(kx, (B, 30), jnp.float32)
    params = init_params(key)

    out = anomaly_detector_forward(x, params)   # bt=256, grid=(2,), "parallel"
    out = jax.block_until_ready(out)
    assert out.shape == (B, 1)

    ref_matched = reference_forward(x, params, x_dtype=jnp.bfloat16, w_dtype=jnp.bfloat16)
    ref_f32 = reference_forward(x, params)
    assert jnp.allclose(out, ref_matched, atol=1e-2, rtol=1e-2), "mismatch vs cast-matched reference"
    assert jnp.allclose(out, ref_f32, atol=5e-2, rtol=5e-2), "mismatch vs f32 reference"

    print("KERNEL_OK")
</pallas_src>

<mosaic_0001>
module attributes {stable_mosaic.version = 11 : i64} {
  func.func @_mlp_kernel(%arg0: i32, %arg1: memref<32x256xbf16, #tpu.memory_space<vmem>>, %arg2: memref<5x32x32xbf16, #tpu.memory_space<vmem>>, %arg3: memref<5x32x1xf32, #tpu.memory_space<vmem>>, %arg4: memref<1x256xf32, #tpu.memory_space<vmem>>) attributes {dimension_semantics = [#tpu.dimension_semantics<parallel>], iteration_bounds = array<i64: 2>, scalar_prefetch = 0 : i64, scratch_operands = 0 : i64, tpu.core_type = #tpu.core_type<tc>, window_params = [{transform_indices = @transform_0, window_bounds = array<i64: 32, 256>}, {pipeline_mode = #tpu.pipeline_mode<synchronous>, transform_indices = @transform_1, window_bounds = array<i64: 5, 32, 32>}, {pipeline_mode = #tpu.pipeline_mode<synchronous>, transform_indices = @transform_2, window_bounds = array<i64: 5, 32, 1>}, {transform_indices = @transform_3, window_bounds = array<i64: 1, 256>}]} {
    %c0 = arith.constant 0 : index
    %c0_0 = arith.constant 0 : index
    %0 = vector.load %arg1[%c0, %c0_0] : memref<32x256xbf16, #tpu.memory_space<vmem>>, vector<32x256xbf16>
    %c0_1 = arith.constant 0 : index
    %c0_2 = arith.constant 0 : index
    %c0_3 = arith.constant 0 : index
    %1 = vector.load %arg2[%c0_1, %c0_2, %c0_3] : memref<5x32x32xbf16, #tpu.memory_space<vmem>>, vector<1x16x32xbf16>
    %2 = vector.shape_cast %1 : vector<1x16x32xbf16> to vector<16x32xbf16>
    %cst = arith.constant dense<0.000000e+00> : vector<16x256xf32>
    %3 = tpu.matmul %2, %0, %cst {dimension_numbers = #tpu.dot_dimension_numbers<[1], [0], [0], [1], [0, 0, 1, 1], [], []>} : vector<16x32xbf16>, vector<32x256xbf16>, vector<16x256xf32> -> vector<16x256xf32>
    %c0_4 = arith.constant 0 : index
    %c0_5 = arith.constant 0 : index
    %c0_6 = arith.constant 0 : index
    %4 = vector.load %arg3[%c0_4, %c0_5, %c0_6] : memref<5x32x1xf32, #tpu.memory_space<vmem>>, vector<1x16x1xf32>
    %5 = vector.shape_cast %4 : vector<1x16x1xf32> to vector<16x1xf32>
    %6 = vector.broadcast %5 : vector<16x1xf32> to vector<16x256xf32>
    %7 = arith.addf %3, %6 : vector<16x256xf32>
    %cst_7 = arith.constant 0.000000e+00 : f32
    %8 = vector.broadcast %cst_7 : f32 to vector<16x256xf32>
    %9 = arith.maximumf %7, %8 : vector<16x256xf32>
    %c1 = arith.constant 1 : index
    %c0_8 = arith.constant 0 : index
    %c0_9 = arith.constant 0 : index
    %10 = vector.load %arg2[%c1, %c0_8, %c0_9] : memref<5x32x32xbf16, #tpu.memory_space<vmem>>, vector<1x24x16xbf16>
    %11 = vector.shape_cast %10 : vector<1x24x16xbf16> to vector<24x16xbf16>
    %12 = arith.extf %11 : vector<24x16xbf16> to vector<24x16xf32>
    %cst_10 = arith.constant dense<0.000000e+00> : vector<24x256xf32>
    %13 = tpu.matmul %12, %9, %cst_10 {dimension_numbers = #tpu.dot_dimension_numbers<[1], [0], [0], [1], [0, 0, 1, 1], [], []>} : vector<24x16xf32>, vector<16x256xf32>, vector<24x256xf32> -> vector<24x256xf32>
    %c1_11 = arith.constant 1 : index
    %c0_12 = arith.constant 0 : index
    %c0_13 = arith.constant 0 : index
    %14 = vector.load %arg3[%c1_11, %c0_12, %c0_13] : memref<5x32x1xf32, #tpu.memory_space<vmem>>, vector<1x24x1xf32>
    %15 = vector.shape_cast %14 : vector<1x24x1xf32> to vector<24x1xf32>
    %16 = vector.broadcast %15 : vector<24x1xf32> to vector<24x256xf32>
    %17 = arith.addf %13, %16 : vector<24x256xf32>
    %cst_14 = arith.constant 0.000000e+00 : f32
    %18 = vector.broadcast %cst_14 : f32 to vector<24x256xf32>
    %19 = arith.maximumf %17, %18 : vector<24x256xf32>
    %c2 = arith.constant 2 : index
    %c0_15 = arith.constant 0 : index
    %c0_16 = arith.constant 0 : index
    %20 = vector.load %arg2[%c2, %c0_15, %c0_16] : memref<5x32x32xbf16, #tpu.memory_space<vmem>>, vector<1x24x24xbf16>
    %21 = vector.shape_cast %20 : vector<1x24x24xbf16> to vector<24x24xbf16>
    %22 = arith.extf %21 : vector<24x24xbf16> to vector<24x24xf32>
    %cst_17 = arith.constant dense<0.000000e+00> : vector<24x256xf32>
    %23 = tpu.matmul %22, %19, %cst_17 {dimension_numbers = #tpu.dot_dimension_numbers<[1], [0], [0], [1], [0, 0, 1, 1], [], []>} : vector<24x24xf32>, vector<24x256xf32>, vector<24x256xf32> -> vector<24x256xf32>
    %c2_18 = arith.constant 2 : index
    %c0_19 = arith.constant 0 : index
    %c0_20 = arith.constant 0 : index
    %24 = vector.load %arg3[%c2_18, %c0_19, %c0_20] : memref<5x32x1xf32, #tpu.memory_space<vmem>>, vector<1x24x1xf32>
    %25 = vector.shape_cast %24 : vector<1x24x1xf32> to vector<24x1xf32>
    %26 = vector.broadcast %25 : vector<24x1xf32> to vector<24x256xf32>
    %27 = arith.addf %23, %26 : vector<24x256xf32>
    %cst_21 = arith.constant 0.000000e+00 : f32
    %28 = vector.broadcast %cst_21 : f32 to vector<24x256xf32>
    %29 = arith.maximumf %27, %28 : vector<24x256xf32>
    %c3 = arith.constant 3 : index
    %c0_22 = arith.constant 0 : index
    %c0_23 = arith.constant 0 : index
    %30 = vector.load %arg2[%c3, %c0_22, %c0_23] : memref<5x32x32xbf16, #tpu.memory_space<vmem>>, vector<1x24x24xbf16>
    %31 = vector.shape_cast %30 : vector<1x24x24xbf16> to vector<24x24xbf16>
    %32 = arith.extf %31 : vector<24x24xbf16> to vector<24x24xf32>
    %cst_24 = arith.constant dense<0.000000e+00> : vector<24x256xf32>
    %33 = tpu.matmul %32, %29, %cst_24 {dimension_numbers = #tpu.dot_dimension_numbers<[1], [0], [0], [1], [0, 0, 1, 1], [], []>} : vector<24x24xf32>, vector<24x256xf32>, vector<24x256xf32> -> vector<24x256xf32>
    %c3_25 = arith.constant 3 : index
    %c0_26 = arith.constant 0 : index
    %c0_27 = arith.constant 0 : index
    %34 = vector.load %arg3[%c3_25, %c0_26, %c0_27] : memref<5x32x1xf32, #tpu.memory_space<vmem>>, vector<1x24x1xf32>
    %35 = vector.shape_cast %34 : vector<1x24x1xf32> to vector<24x1xf32>
    %36 = vector.broadcast %35 : vector<24x1xf32> to vector<24x256xf32>
    %37 = arith.addf %33, %36 : vector<24x256xf32>
    %cst_28 = arith.constant 0.000000e+00 : f32
    %38 = vector.broadcast %cst_28 : f32 to vector<24x256xf32>
    %39 = arith.maximumf %37, %38 : vector<24x256xf32>
    %c4 = arith.constant 4 : index
    %c0_29 = arith.constant 0 : index
    %c0_30 = arith.constant 0 : index
    %40 = vector.load %arg2[%c4, %c0_29, %c0_30] : memref<5x32x32xbf16, #tpu.memory_space<vmem>>, vector<1x8x24xbf16>
    %41 = vector.shape_cast %40 : vector<1x8x24xbf16> to vector<8x24xbf16>
    %42 = arith.extf %41 : vector<8x24xbf16> to vector<8x24xf32>
    %cst_31 = arith.constant dense<0.000000e+00> : vector<8x256xf32>
    %43 = tpu.matmul %42, %39, %cst_31 {dimension_numbers = #tpu.dot_dimension_numbers<[1], [0], [0], [1], [0, 0, 1, 1], [], []>} : vector<8x24xf32>, vector<24x256xf32>, vector<8x256xf32> -> vector<8x256xf32>
    %c4_32 = arith.constant 4 : index
    %c0_33 = arith.constant 0 : index
    %c0_34 = arith.constant 0 : index
    %44 = vector.load %arg3[%c4_32, %c0_33, %c0_34] : memref<5x32x1xf32, #tpu.memory_space<vmem>>, vector<1x8x1xf32>
    %45 = vector.shape_cast %44 : vector<1x8x1xf32> to vector<8x1xf32>
    %46 = vector.broadcast %45 : vector<8x1xf32> to vector<8x256xf32>
    %47 = arith.addf %43, %46 : vector<8x256xf32>
    %48 = vector.extract_strided_slice %47 {offsets = [0, 0], sizes = [1, 256], strides = [1, 1]} : vector<8x256xf32> to vector<1x256xf32>
    %c0_35 = arith.constant 0 : index
    %c0_36 = arith.constant 0 : index
    %49 = vector.load %arg4[%c0_35, %c0_36] : memref<1x256xf32, #tpu.memory_space<vmem>>, vector<1x256xf32>
    tpu.vector_store %arg4[%c0_35, %c0_36], %48 {strides = array<i32>} : memref<1x256xf32, #tpu.memory_space<vmem>>, vector<1x256xf32>,
    return
  }
  func.func @transform_0(%arg0: i32) -> (i32, i32) {
    %c0_i32 = arith.constant 0 : i32
    %c0_i32_0 = arith.constant 0 : i32
    return %c0_i32, %arg0 : i32, i32
  }
  func.func @transform_1(%arg0: i32) -> (i32, i32, i32) {
    %c0_i32 = arith.constant 0 : i32
    %c0_i32_0 = arith.constant 0 : i32
    %c0_i32_1 = arith.constant 0 : i32
    %c0_i32_2 = arith.constant 0 : i32
    return %c0_i32, %c0_i32_0, %c0_i32_1 : i32, i32, i32
  }
  func.func @transform_2(%arg0: i32) -> (i32, i32, i32) {
    %c0_i32 = arith.constant 0 : i32
    %c0_i32_0 = arith.constant 0 : i32
    %c0_i32_1 = arith.constant 0 : i32
    %c0_i32_2 = arith.constant 0 : i32
    return %c0_i32, %c0_i32_0, %c0_i32_1 : i32, i32, i32
  }
  func.func @transform_3(%arg0: i32) -> (i32, i32) {
    %c0_i32 = arith.constant 0 : i32
    %c0_i32_0 = arith.constant 0 : i32
    return %c0_i32, %arg0 : i32, i32
  }
}

</mosaic_0001>

<bundles_post_ra>
// kernel: tpu_custom_call.1
= control target key start
LH: loop header
LB: loop body
LE: loop exit
PB: predicated region body
PF: predicated region fallthrough
CT: control target
= control target key end

     0   :  { %8 = vsyncpa [#allocation4], 0  ;;  %s1277_s0 = inlined_call_operand.vmem [shape: bf16[32,512], index: 0, kind: input, shape index: {}]   ;;  %s1278_s1 = inlined_call_operand.vmem [shape: bf16[5,32,32], index: 1, kind: input, shape index: {}]   ;;  %s1279_s2 = inlined_call_operand.vmem [shape: f32[5,32,1], index: 2, kind: input, shape index: {}]   ;;  %s1280_s3 = inlined_call_operand.hbm [shape: f32[1,512], index: 3, kind: output, shape index: {}]  }
   0x1   :  { %10 = vsyncpa [#allocation4 + $0x1], 0  ;;  %s1096_s12 = smov 0   ;;  %s1098_s13 = smov 0  }
   0x2   :  { %s1100_s14 = smov 0   ;;  %s1102_s15 = smov 0  }
   0x3 LB: > { %s873_s16 = sadd.s32 4294967295, %s1070_s15   ;;  %s874_s17 = sadd.s32 4294967294, %s1070_s15   ;;  %s1070_s15 = sphi %s1102_s15, %s1286_s15   ;;  %s1066_s14 = sphi %s1100_s14, %s1285_s14   ;;  %s1062_s13 = sphi %s1098_s13, %s1284_s13   ;;  %s1058_s12 = sphi %s1096_s12, %s1283_s12  }
   0x4   : > { %s1119_s18 = sadd.s32 1, %s1070_s15   ;;  %s23_s19 = sadd.s32 1, %s1066_s14 }
   0x5   : > { %s20_s20 = ssub.s32 %s1070_s15, %s1119_s18  ;;  %p30_p0 = scmp.ne.s32.totalorder %s1066_s14, %s1062_s13 }
   0x6   : > { %p21_p1 = scmp.eq.s32.totalorder %s20_s20, 0  ;;  %p31_p2 = scmp.eq.s32.totalorder %s1070_s15, 0 }
   0x7   : > { %p102_p3 = scmp.eq.s32.totalorder %s873_s16, 1  ;;  %p107_p4 = scmp.ne.s32.totalorder %s1062_s13, %s1058_s12 }
   0x8   : > { %s1132_s21 = scalar_select %p21_p1, %s1066_s14, %s23_s19  }
   0x9   : > { %p32_p5 = por %p31_p2, %p30_p0  ;;  %p1134_p6 = por %p102_p3, %p30_p0 }
   0xa   : > { %p108_p7 = scmp.eq.s32.totalorder %s874_s17, 1  ;;  %p876_p9 = scmp.ge.s32.totalorder %s1070_s15, 2 }
   0xc   : > { %p1138_p8 = por %p108_p7, %p107_p4  ;;  %130 = sbr.rel (%p876_p9) target bundleno = 26 (0x1a), region = 24 }
  0x13   : > { %133 = sbr.rel (!%p32_p5) target bundleno = 26 (0x1a), region = 28  ;;  %s135_s24 = sand.u32 (%p32_p5), 1, %s1066_s14  }
  0x14   : > { %s924_s25 = sshll.u32 (%p32_p5), %s1070_s15, 3  ;;  %s877_s26 = sshll.u32 (%p32_p5), %s135_s24, 5 }
  0x15   : > { %s140_s29 = scalar_lea.vmem (%p32_p5), %s1277_s0, %s924_s25  ;;  %s137_s30 = scalar_lea.vmem (%p32_p5), [#allocation2], %s877_s26 }
  0x16   : > { %v174_v0 = vld [vmem:[%s140_s29] sm:$0xff] (%p32_p5)  ;;  %v176_v1 = vld [vmem:[%s140_s29 + $0x10] sm:$0xff] (%p32_p5) }
  0x17   : > { %v178_v2 = vld [vmem:[%s140_s29 + $0x20] sm:$0xff] (%p32_p5)  ;;  %175 = vst [vmem:[%s137_s30] sm:$0xff] (%p32_p5), %v174_v0  ;;  %177 = vst [vmem:[%s137_s30 + $0x8] sm:$0xff] (%p32_p5), %v176_v1  ;;  %v180_v3 = vld [vmem:[%s140_s29 + $0x30] sm:$0xff] (%p32_p5) }
  0x18   : > { %179 = vst [vmem:[%s137_s30 + $0x10] sm:$0xff] (%p32_p5), %v178_v2  ;;  %181 = vst [vmem:[%s137_s30 + $0x18] sm:$0xff] (%p32_p5), %v180_v3 }
  0x1a PF: > { %p880_p10 = scmp.ge.s32.totalorder %s1070_s15, 1  ;;  %p186_p11 = scmp.lt.s32.totalorder %s1070_s15, 3 }
  0x1c   : > { %p187_p12 = pnand %p880_p10, %p186_p11 }
  0x1d   : > { %s1153_s4 = sand.u32 (!%p187_p12), 1, %s1062_s13   ;;  %v1072_v4 = vmov (!%p187_p12), 0   ;;  %v225_v5 = vld [vmem:[%s1279_s2] sm:$0xff] (!%p187_p12)  ;;  %v226_v6 = vld [vmem:[%s1279_s2 + $0x8] sm:$0xff] (!%p187_p12)  ;;  %v894_v11 = vld [vmem:[%s1279_s2 + $0x30] sm:$0xff] (!%p187_p12)  ;;  %vm262_vm0 = vcmask (!%p187_p12), 261120  }
  0x1e   : > { %190 = sbr.rel (%p187_p12) target bundleno = 1188 (0x4a4), region = 66  ;;  %s881_s5 = sshll.u32 (!%p187_p12), %s1153_s4, 5  ;;  %298 = vmatprep.mubr.bf16.mxu0 (!%p187_p12), %v1072_v4  ;;  %999 = vset.pattern.permute.xlu0 (!%p187_p12), %v1072_v4  ;;  %v1007_v12 = vld [vmem:[%s1278_s1] sm:$0xff] (!%p187_p12)   ;;  %v902_v13 = vld [vmem:[%s1279_s2 + $0x48] sm:$0xff] (!%p187_p12)  ;;  %v912_v15 = vld [vmem:[%s1279_s2 + $0x70] sm:$0xff] (!%p187_p12)  ;;  %v1073_v16 = vmov (!%p187_p12), 0.0  }
  0x1f   : > { %229 = vperm.xlu0 (!%p187_p12), %999, %v225_v5   ;;  %1000 = vset.pattern.permute.xlu1 (!%p187_p12), %v1072_v4  ;;  %s195_s10 = scalar_lea.vmem (!%p187_p12), [#allocation2], %s881_s5  ;;  %v910_v14 = vld [vmem:[%s1279_s2 + $0x60] sm:$0xff] (!%p187_p12)  ;;  %v893_v18 = vld [vmem:[%s1279_s2 + $0x28] sm:$0xff] (!%p187_p12)  ;;  %v903_v20 = vld [vmem:[%s1279_s2 + $0x50] sm:$0xff] (!%p187_p12)  ;;  %vm339_vm1 = vcmask (!%p187_p12), 130048   ;;  %vm464_vm2 = vcmask (!%p187_p12), 195584  }
  0x20   : > { %v1001_v7 = vld [vmem:[%s195_s10 + $0x4] ss:$8 sps:$4 sm:$0xff] (!%p187_p12)   ;;  %v1003_v8 = vld [vmem:[%s195_s10] ss:$8 sps:$4 sm:$0xff] (!%p187_p12)   ;;  %v1004_v9 = vld [vmem:[%s195_s10 + $0x14] ss:$8 sps:$4 sm:$0xff] (!%p187_p12)   ;;  %413 = vmatprep.mubr.f32.mxu1 (!%p187_p12), %v1073_v16 }
  0x21   : > { %266 = vmatprep.subr.bf16.mxu0 (!%p187_p12), %v1001_v7  ;;  %v1006_v10 = vld [vmem:[%s195_s10 + $0x10] ss:$8 sps:$4 sm:$0xff] (!%p187_p12)   ;;  %v892_v17 = vld [vmem:[%s1279_s2 + $0x20] sm:$0xff] (!%p187_p12)  ;;  %v911_v21 = vld [vmem:[%s1279_s2 + $0x68] sm:$0xff] (!%p187_p12)  ;;  %s882_s9 = sshll.u32 (!%p187_p12), %s1153_s4, 1  ;;  %s925_s10 = sshll.u32 (!%p187_p12), %s873_s16, 5 }
  0x22   : > { %267 = vmatpush1.bf16.msra.mxu0 (!%p187_p12), %v1003_v8  ;;  %326 = vperm.xlu1 (!%p187_p12), %1000, %v892_v17   ;;  %v901_v19 = vld [vmem:[%s1279_s2 + $0x40] sm:$0xff] (!%p187_p12)  ;;  %v938_v38 = vld [vmem:[%s1278_s1 + $0x10] sm:$0xff] (!%p187_p12)   ;;  %v891_v42 = vld [vmem:[%s1278_s1 + $0x18] ss:$16 sps:$4 sm:$0xff] (!%p187_p12)   ;;  %s215_s11 = scalar_lea.vmem (!%p187_p12), [#allocation3], %s882_s9  ;;  %s1233_s24 = scalar_lea.hbm (!%p187_p12), %s1280_s3, %s925_s10 }
  0x23   : > { %234 = vperm.xlu0 (!%p187_p12), %999, %v226_v6   ;;  %268 = vmatprep.subr.bf16.mxu0 (!%p187_p12), %v1004_v9  ;;  %v917_v22 = vld [vmem:[%s1279_s2 + $0x80] sm:$0xff] (!%p187_p12)  ;;  %v928_v40 = vunpack.c.l.bf16 (!%p187_p12), %v938_v38  ;;  %v929_v41 = vunpack.c.h.bf16 (!%p187_p12), %v938_v38  ;;  %v319_v43 = vunpack.c.l.bf16 (!%p187_p12), %v891_v42  ;;  %v444_v6 = vunpack.c.h.bf16 (!%p187_p12), %v891_v42  ;;  %s809_s17 = sshll.u32 (!%p187_p12), %s215_s11, 4  ;;  %s795_s25 = scalar_lea.sflag (!%p187_p12), [#allocation4], %s1153_s4  ;;  %s1235_s17 = int_to_ptr.vmem [resolvable:$true] %s809_s17 }
  0x24   : > { %v939_v1 = vld [vmem:[%s1278_s1 + $0x20] sm:$0xff] (!%p187_p12)   ;;  %s1008_s26 = scalar_lea.vmem (!%p187_p12), %s1235_s17, 32  ;;  %s1075_s16 = smov (!%p187_p12), [#allocation3]  }
  0x25   : > { %v932_v3 = vunpack.c.l.bf16 %v939_v1  ;;  %v933_v5 = vunpack.c.h.bf16 %v939_v1  ;;  %p1009_p13 = scmp.ne.s32.totalorder %s1235_s17, %s1008_s26  ;;  %s1012_s27 = sshll.u32 %s1075_s16, 4  ;;  %s1013_s27 = int_to_ptr.vmem [resolvable:$false] %s1012_s27 }
  0x26   : > { %269 = vmatpush1.bf16.msra.mxu0 %v1006_v10  ;;  %331 = vperm.xlu1 %1000, %v893_v18   ;;  %s1014_s28 = scalar_lea.vmem %s1013_s27, 64  ;;  %p1015_p2 = scmp.lt.s32.totalorder %s1235_s17, %s1013_s27 }
  0x27   : > { %336 = vperm.xlu0 %999, %v894_v11   ;;  %p1010_p0 = pnand %p1009_p13, %p1134_p6  ;;  %p1016_p3 = scmp.lt.s32.totalorder %s1014_s28, %s1008_s26 }
  0x29   : > { %888 = vmatmul.mubr.msk.bf16.vlgmr.msra.gmra.mrb[0].mxu0 %vm262_vm0, %v1007_v12  ;;  %p1011_p1 = pneg %p1010_p0  ;;  %p1017_p4 = por %p1016_p3, %p1015_p2 }
  0x2a   : > { %538 = vmatprep.mubr.f32.mxu0 %v1073_v16  ;;  %451 = vperm.xlu1 %1000, %v901_v19  }
  0x2b   : > { %456 = vperm.xlu0 %999, %v902_v13   ;;  %p1018_p5 = pnand %p1017_p4, %p1011_p1 }
  0x2e   : > { %461 = vperm.xlu1 %1000, %v903_v20  }
  0x2f   : > { %576 = vperm.xlu0 %999, %v910_v14  }
  0x32   : > { %581 = vperm.xlu1 %1000, %v911_v21  }
  0x33   : > { %586 = vperm.xlu0 %999, %v912_v15  }
  0x36   : > { %694 = vperm.xlu1 %1000, %v917_v22  }
  0x9e   : > { %v230_v23 = vpop.permute.xlu0 %229 }
  0xa1   : > { %v327_v44 = vpop.permute.xlu1 %326 }
  0xa2   : > { %v235_v27 = vpop.permute.xlu0 %234 }
  0xa5   : > { %v332_v48 = vpop.permute.xlu1 %331 }
  0xa6   : > { %v337_v59 = vpop.permute.xlu0 %336 }
  0xa9   : > { %v452_v9 = vpop.permute.xlu1 %451 }
  0xaa   : > { %v457_v11 = vpop.permute.xlu0 %456 }
  0xae   : > { %v577_v38 = vpop.permute.xlu0 %576 }
  0xfc   : > { %v300_v24 = vpop.f32.mrb[0].mxu0 }
  0xfd   : > { %v301_v25 = vadd.f32 %v300_v24, %v230_v23  ;;  %v302_v26 = vpop.f32.mrb[1].mxu0 }
  0xfe   : > { %v303_v28 = vadd.f32 %v302_v26, %v230_v23  ;;  %v304_v29 = vpop.f32.mrb[2].mxu0  ;;  %v462_v23 = vpop.permute.xlu1 %461 }
  0xff   : > { %v305_v30 = vadd.f32 %v304_v29, %v235_v27  ;;  %v306_v31 = vpop.f32.mrb[3].mxu0  ;;  %v309_v33 = vmax.f32 %v301_v25, 0.0  ;;  %v940_v29 = vld [vmem:[%s1278_s1 + $0x30] sm:$0xff]  }
 0x100   : > { %v307_v32 = vadd.f32 %v306_v31, %v235_v27  ;;  %v310_v35 = vmax.f32 %v303_v28, 0.0  ;;  %v936_v31 = vunpack.c.l.bf16 %v940_v29 }
 0x101   : > { %v311_v34 = vmax.f32 %v305_v30, 0.0 }
 0x102   : > { %v312_v36 = vmax.f32 %v307_v32, 0.0 }
 0x103   : > { %v943_v37 = vpack.c.bf16 %v311_v34, %v309_v33  ;;  %v937_v33 = vunpack.c.h.bf16 %v940_v29  ;;  %v909_v34 = vld [vmem:[%s1278_s1 + $0x38] ss:$8 sps:$4 sm:$0xff]  }
 0x104   : > { %v941_v39 = vpack.c.bf16 %v312_v36, %v310_v35  ;;  %v569_v35 = vunpack.c.l.bf16 %v909_v34 }
 0x106   : > { %942 = vmatprep.subr.bf16.mxu1 %v941_v39 }
 0x107   : > { %944 = vmatpush1.bf16.msra.mxu1 %v943_v37 }
 0x10a   : > { %895 = vmatmul.mubr.msk.f32.vlgmr.msra.gmra.mrb[0].mxu1 %vm339_vm1, %v928_v40  ;;  %v582_v40 = vpop.permute.xlu1 %581 }
 0x10b   : > { %419 = vmatprep.mubr.f32.mxu1 %v1073_v16 }
 0x10e   : > { %896 = vmatmul.mubr.msk.f32.gmra.mrb[2].mxu1 %vm339_vm1, %v929_v41 }
 0x10f   : > { %425 = vmatprep.mubr.f32.mxu1 %v1073_v16 }
 0x112   : > { %897 = vmatmul.mubr.msk.f32.gmra.mrb[4].mxu1 %vm339_vm1, %v319_v43 }
 0x113   : > { %662 = vmatprep.mubr.f32.mxu1 %v1073_v16 }
 0x1dd   : > { %v415_v45 = vpop.f32.mrb[0].mxu1 }
 0x1de   : > { %v417_v46 = vpop.f32.mrb[1].mxu1  ;;  %v416_v47 = vadd.f32 %v415_v45, %v327_v44 }
 0x1df   : > { %v418_v49 = vadd.f32 %v417_v46, %v327_v44 }
 0x1e0   : > { %v432_v54 = vmax.f32 %v416_v47, 0.0 }
 0x1e1   : > { %v421_v50 = vpop.f32.mrb[2].mxu1  ;;  %v433_v56 = vmax.f32 %v418_v49, 0.0 }
 0x1e2   : > { %v422_v51 = vadd.f32 %v421_v50, %v332_v48  ;;  %v423_v52 = vpop.f32.mrb[3].mxu1 }
 0x1e3   : > { %v424_v53 = vadd.f32 %v423_v52, %v332_v48 }
 0x1e4   : > { %v434_v55 = vmax.f32 %v422_v51, 0.0  ;;  %v587_v51 = vpop.permute.xlu0 %586 }
 0x1e5   : > { %v435_v57 = vmax.f32 %v424_v53, 0.0  ;;  %v427_v58 = vpop.f32.mrb[4].mxu1 }
 0x1e6   : > { %v947_v60 = vpack.c.bf16 %v434_v55, %v432_v54  ;;  %v429_v61 = vpop.f32.mrb[5].mxu1  ;;  %v428_v0 = vadd.f32 %v427_v58, %v337_v59 }
 0x1e7   : > { %v945_v62 = vpack.c.bf16 %v435_v57, %v433_v56  ;;  %v430_v63 = vadd.f32 %v429_v61, %v337_v59  ;;  %v689_v57 = vunpack.c.h.bf16 %v909_v34  ;;  %v1074_v59 = vmov 1966171168  }
 0x1e8   : > { %v436_v4 = vmax.f32 %v428_v0, 0.0  ;;  %v777_v61 = vlaneseq  ;;  %v695_v0 = vpop.permute.xlu1 %694 }
 0x1e9   : > { %v437_v2 = vmax.f32 %v430_v63, 0.0  ;;  %946 = vmatprep.subr.bf16.mxu0 %v945_v62 }
 0x1ea   : > { %948 = vmatpush1.bf16.msra.mxu0 %v947_v60  ;;  %v775_v60 = vunpack.c.l.s4 %v1074_v59  ;;  %v778_v63 = vshrl.u32 %v777_v61, 7  ;;  %vm791_vm3 = vcmp.lt.s32.totalorder %v777_v61, 256 }
 0x1eb   : > { %478 = vmatprep.subr.mxu0 %v437_v2 }
 0x1ec   : > { %v776_v62 = vunpack.c.0.s8 %v775_v60 }
 0x1ee   : > { %479 = vmatpush1.msra.mxu0 %v436_v4 }
 0x1ef   : > { %904 = vmatmul.mubr.msk.f32.vlgmr.msra.gmra.mrb[4].mxu0 %vm464_vm2, %v932_v3 }
 0x1f0   : > { %544 = vmatprep.mubr.f32.mxu0 %v1073_v16 }
 0x1f3   : > { %905 = vmatmul.mubr.msk.f32.gmra.mrb[6].mxu0 %vm464_vm2, %v933_v5  ;;  %v779_v5 = vsub.s32 %v776_v62, %v778_v63 }
 0x1f4   : > { %550 = vmatprep.mubr.f32.mxu0 %v1073_v16 }
 0x1f7   : > { %906 = vmatmul.mubr.msk.f32.gmra.mrb[8].mxu0 %vm464_vm2, %v444_v6 }
 0x1f8   : > { %764 = vmatprep.mubr.f32.mxu0 %v1073_v16 }
 0x2c2   : > { %v540_v7 = vpop.f32.mrb[4].mxu0 }
 0x2c3   : > { %v542_v8 = vpop.f32.mrb[5].mxu0  ;;  %v541_v10 = vadd.f32 %v540_v7, %v452_v9 }
 0x2c4   : > { %v543_v12 = vadd.f32 %v542_v8, %v452_v9 }
 0x2c5   : > { %v557_v18 = vmax.f32 %v541_v10, 0.0 }
 0x2c6   : > { %v546_v13 = vpop.f32.mrb[6].mxu0  ;;  %v558_v20 = vmax.f32 %v543_v12, 0.0 }
 0x2c7   : > { %v547_v14 = vadd.f32 %v546_v13, %v457_v11  ;;  %v548_v15 = vpop.f32.mrb[7].mxu0 }
 0x2c8   : > { %v549_v17 = vadd.f32 %v548_v15, %v457_v11 }
 0x2c9   : > { %v559_v19 = vmax.f32 %v547_v14, 0.0 }
 0x2ca   : > { %v560_v21 = vmax.f32 %v549_v17, 0.0  ;;  %v552_v22 = vpop.f32.mrb[8].mxu0 }
 0x2cb   : > { %v951_v24 = vpack.c.bf16 %v559_v19, %v557_v18  ;;  %v554_v25 = vpop.f32.mrb[9].mxu0  ;;  %v553_v28 = vadd.f32 %v552_v22, %v462_v23 }
 0x2cc   : > { %v949_v26 = vpack.c.bf16 %v560_v21, %v558_v20  ;;  %v555_v27 = vadd.f32 %v554_v25, %v462_v23 }
 0x2cd   : > { %v561_v32 = vmax.f32 %v553_v28, 0.0 }
 0x2ce   : > { %v562_v30 = vmax.f32 %v555_v27, 0.0  ;;  %950 = vmatprep.subr.bf16.mxu1 %v949_v26 }
 0x2cf   : > { %952 = vmatpush1.bf16.msra.mxu1 %v951_v24 }
 0x2d0   : > { %602 = vmatprep.subr.mxu1 %v562_v30 }
 0x2d3   : > { %603 = vmatpush1.msra.mxu1 %v561_v32 }
 0x2d4   : > { %913 = vmatmul.mubr.msk.f32.vlgmr.msra.gmra.mrb[6].mxu1 %vm464_vm2, %v936_v31 }
 0x2d5   : > { %668 = vmatprep.mubr.f32.mxu1 %v1073_v16 }
 0x2d8   : > { %914 = vmatmul.mubr.msk.f32.gmra.mrb[8].mxu1 %vm464_vm2, %v937_v33 }
 0x2d9   : > { %674 = vmatprep.mubr.f32.mxu1 %v1073_v16 }
 0x2dc   : > { %915 = vmatmul.mubr.msk.f32.gmra.mrb[10].mxu1 %vm464_vm2, %v569_v35 }
 0x3a7   : > { %v664_v36 = vpop.f32.mrb[6].mxu1 }
 0x3a8   : > { %v666_v37 = vpop.f32.mrb[7].mxu1  ;;  %v665_v39 = vadd.f32 %v664_v36, %v577_v38 }
 0x3a9   : > { %v667_v41 = vadd.f32 %v666_v37, %v577_v38 }
 0x3aa   : > { %v681_v46 = vmax.f32 %v665_v39, 0.0 }
 0x3ab   : > { %v670_v42 = vpop.f32.mrb[8].mxu1  ;;  %v682_v48 = vmax.f32 %v667_v41, 0.0 }
 0x3ac   : > { %v671_v43 = vadd.f32 %v670_v42, %v582_v40  ;;  %v672_v44 = vpop.f32.mrb[9].mxu1 }
 0x3ad   : > { %v673_v45 = vadd.f32 %v672_v44, %v582_v40 }
 0x3ae   : > { %v683_v47 = vmax.f32 %v671_v43, 0.0 }
 0x3af   : > { %v684_v49 = vmax.f32 %v673_v45, 0.0  ;;  %v676_v50 = vpop.f32.mrb[10].mxu1 }
 0x3b0   : > { %v955_v52 = vpack.c.bf16 %v683_v47, %v681_v46  ;;  %v678_v16 = vpop.f32.mrb[11].mxu1  ;;  %v677_v55 = vadd.f32 %v676_v50, %v587_v51 }
 0x3b1   : > { %v953_v53 = vpack.c.bf16 %v684_v49, %v682_v48  ;;  %v679_v54 = vadd.f32 %v678_v16, %v587_v51 }
 0x3b2   : > { %v685_v58 = vmax.f32 %v677_v55, 0.0 }
 0x3b3   : > { %v686_v56 = vmax.f32 %v679_v54, 0.0  ;;  %954 = vmatprep.subr.bf16.mxu0 %v953_v53 }
 0x3b4   : > { %956 = vmatpush1.bf16.msra.mxu0 %v955_v52 }
 0x3b5   : > { %704 = vmatprep.subr.mxu0 %v686_v56 }
 0x3b8   : > { %705 = vmatpush1.msra.mxu0 %v685_v58 }
 0x3b9   : > { %918 = vmatmul.mubr.msk.f32.vlgmr.msra.gmra.mrb[10].mxu0 %vm464_vm2, %v689_v57 }
 0x48c   : > { %v766_v1 = vpop.f32.mrb[10].mxu0 }
 0x48d   : > { %v767_v2 = vadd.f32 %v766_v1, %v695_v0  ;;  %v768_v3 = vpop.f32.mrb[11].mxu0 }
 0x48e   : > { %v769_v4 = vadd.f32 %v768_v3, %v695_v0 }
 0x490   : > { %v773_v6 = vcombine.low %v767_v2, %v769_v4 }
 0x492   : > { %v780_v7 = vrot.slane %v773_v6, %v779_v5 }
 0x494   : > { %v787_v8 = vrot.slane %v780_v7, %v779_v5 }
 0x496   : > { %793 = vst.msk [vmem:[%s215_s11] sm:$0x3] %vm791_vm3, %v787_v8 }
 0x497   : > { %1021 = shalt.err (!%p1018_p5)
}
 0x498   : > { %s1022_s4 = scalar_lea.hbm %s1233_s24, 32  ;;  %s1026_s5 = scalar_lea.hbm %s1280_s3, 64 }
 0x499   : > { %p1023_p7 = scmp.ne.s32.totalorder %s1233_s24, %s1022_s4  ;;  %p1027_p12 = scmp.lt.u32.totalorder %s1233_s24, %s1280_s3 }
 0x49a   : > { %p1028_p13 = scmp.lt.u32.totalorder %s1026_s5, %s1022_s4  ;;  %p1030_p1 = scmp.lt.u32.totalorder %s1022_s4, %s1233_s24 }
 0x49b   : > { %p1024_p10 = pnand %p1023_p7, %p1134_p6 }
 0x49c   : > { %p1029_p0 = por %p1028_p13, %p1027_p12 }
 0x49d   : > { %p1025_p11 = pneg %p1024_p10 }
 0x49e   : > { %p1031_p2 = por %p1030_p1, %p1029_p0 }
 0x4a0   : > { %p1032_p3 = pnand %p1031_p2, %p1025_p11 }
 0x4a2   : > { %1035 = shalt.err (!%p1032_p3)
}
 0x4a3   : > { %957 = dma.vmem_to_hbm [thread:$0]  (%p1134_p6), %s1235_s17, 32, %s1233_s24, %s795_s25  }
 0x4a4 PF: > { %s821_s8 = sand.u32 1, %s1058_s12   ;;  %p960_p4 = pnand %p876_p9, %p1138_p8 }
 0x4a5   : > { %s822_s9 = scalar_lea.sflag [#allocation4], %s821_s8 }
 0x4a6   : > { %1053 = dma.done.wait (!%p960_p4), %s822_s9, 32  }
 0x4a7   : > { %1055 = vsyncadd (!%p960_p4), %s822_s9, 4294967264  ;;  %p13_p5 = scmp.ge.s32.totalorder %s1119_s18, 4   ;;  %s1283_s12 = smov %s1062_s13 }
 0x4a8   : > { %s1284_s13 = smov %s1066_s14  ;;  %s1285_s14 = smov %s1132_s21 }
 0x4a9   : > { %s1286_s15 = smov %s1119_s18  ;;  %15 = sbr.rel (!%p13_p5) target bundleno = 3 (0x3), region = 118 }
 0x4b0   :  { %827 = vsyncpa [#allocation4], 1 }
 0x4b1   :  { %829 = vsyncpa [#allocation4 + $0x1], 1 }

</bundles_post_ra>
